<compile_context>
chip_gen: v7x
topology: tpu7x:2x2x1
jax: 0.10.0
libtpu: 0.0.40
codegen_flags: <defaults>
</compile_context>

<pallas_src>
import functools

import jax
import jax.numpy as jnp
from jax.experimental import pallas as pl
from jax.experimental.pallas import tpu as pltpu


def _conv_block_kernel(x_ref, sh_ref, bw1_ref, s1_ref, b1_ref,
                       bw2e_ref, bw2o_ref, s2_ref, b2_ref, o_ref):
    f32 = jnp.float32
    bf16 = jnp.bfloat16

    x = x_ref[0]              # (H, W*Cin)  bf16, lane-dense rows
    dn = sh_ref[0]            # (H, H) bf16: (dn @ v)[h] = v[h-1], row 0   -> 0
    up = sh_ref[1]            # (H, H) bf16: (up @ v)[h] = v[h+1], row H-1 -> 0

    def rshift(v, m):
        # Exact zero-filled row shift on the (idle) MXU; rows are copies of bf16
        # values, so the f32->bf16 cast is exact.
        return jnp.dot(m, v, preferred_element_type=f32).astype(bf16)

    def conv3x3(v, v_dn, v_up, bw_ref):
        # 3x3 "same" conv as three banded row-matmuls (ky = 0, 1, 2); kx taps and
        # W-edge zero padding live inside the band matrices.
        return (jnp.dot(v_dn, bw_ref[0], preferred_element_type=f32)
                + jnp.dot(v,    bw_ref[1], preferred_element_type=f32)
                + jnp.dot(v_up, bw_ref[2], preferred_element_type=f32))

    # ---- layer 1: conv3x3 + folded BN + ReLU -------------------------------------
    x_dn, x_up = rshift(x, dn), rshift(x, up)
    h1 = conv3x3(x, x_dn, x_up, bw1_ref)                       # (H, W*Cout) f32
    y1 = jnp.maximum(h1 * s1_ref[...] + b1_ref[...], 0.0).astype(bf16)

    # ---- layer 2: conv3x3 + folded BN + ReLU, weights pre-split even/odd w -------
    y_dn, y_up = rshift(y1, dn), rshift(y1, up)
    he = conv3x3(y1, y_dn, y_up, bw2e_ref)                     # even w columns
    ho = conv3x3(y1, y_dn, y_up, bw2o_ref)                     # odd  w columns
    ye = jnp.maximum(he * s2_ref[...] + b2_ref[...], 0.0)      # (H, (W//2)*Cout) f32
    yo = jnp.maximum(ho * s2_ref[...] + b2_ref[...], 0.0)

    # ---- 2x2 max-pool: W-pool is a pure VPU max (no lane compaction), H-pool a
    #      sublane-pair max.  Output stays lane-aligned. ---------------------------
    vm = jnp.maximum(ye, yo)                                   # W-pooled
    v2 = vm.reshape(vm.shape[0] // 2, 2, vm.shape[1])
    o_ref[0] = jnp.maximum(v2[:, 0, :], v2[:, 1, :])           # (H//2, (W//2)*Cout)
    # Dropout (eval mode) == identity.


def conv_block_forward(x_nchw, p, eps=1e-5):
    B, Cin, H, W = x_nchw.shape
    Cout = p["w1"].shape[-1]
    assert H % 2 == 0 and W % 2 == 0
    Wh = W // 2

    # NCHW -> lane-dense (B, H, W*Cin) rows, bf16 operands for the MXU.
    x = (jnp.transpose(x_nchw, (0, 2, 3, 1))
         .reshape(B, H, W * Cin).astype(jnp.bfloat16))

    # Fold BatchNorm (eval, running stats) + conv bias into a per-channel affine,
    # tiled across the (w, c) lane layout.
    s1 = p["g1"] / jnp.sqrt(p["v1"] + eps)
    o1 = p["bt1"] + s1 * (p["b1"] - p["m1"])
    s2 = p["g2"] / jnp.sqrt(p["v2"] + eps)
    o2 = p["bt2"] + s2 * (p["b2"] - p["m2"])
    s1_t = jnp.tile(s1, W).reshape(1, W * Cout).astype(jnp.float32)
    o1_t = jnp.tile(o1, W).reshape(1, W * Cout).astype(jnp.float32)
    s2_t = jnp.tile(s2, Wh).reshape(1, Wh * Cout).astype(jnp.float32)
    o2_t = jnp.tile(o2, Wh).reshape(1, Wh * Cout).astype(jnp.float32)

    # Band matrices: BW[ky][(u, ci), (w, co)] = W[ky, kx, ci, co] where u = w + kx - 1,
    # clipped at the W edges (== zero padding in W).  E_kx are shifted identities.
    E = jnp.stack([jnp.eye(W, W, k=1 - kx, dtype=jnp.float32) for kx in range(3)])

    def band_weights(wk, e):
        bw = jnp.einsum("xuw,yxio->yuiwo", e, wk)    # (3, W, ci, Wn, co)
        ky, wu, ci, wn, co = bw.shape
        return bw.reshape(ky, wu * ci, wn * co).astype(jnp.bfloat16)

    bw1 = band_weights(p["w1"], E)                   # (3, W*Cin,  W*Cout)
    bw2e = band_weights(p["w2"], E[:, :, 0::2])      # (3, W*Cout, Wh*Cout), even w
    bw2o = band_weights(p["w2"], E[:, :, 1::2])      # (3, W*Cout, Wh*Cout), odd  w

    # Row-shift operators for the ky taps (exact 0/1 matrices, applied on the MXU).
    shifts = jnp.stack([jnp.eye(H, H, k=-1), jnp.eye(H, H, k=1)]).astype(jnp.bfloat16)

    y = pl.pallas_call(
        _conv_block_kernel,
        out_shape=jax.ShapeDtypeStruct((B, H // 2, Wh * Cout), jnp.float32),
        grid=(B,),
        in_specs=[
            pl.BlockSpec((1, H, W * Cin), lambda b: (b, 0, 0)),
            pl.BlockSpec((2, H, H), lambda b: (0, 0, 0)),
            pl.BlockSpec((3, W * Cin, W * Cout), lambda b: (0, 0, 0)),
            pl.BlockSpec((1, W * Cout), lambda b: (0, 0)),
            pl.BlockSpec((1, W * Cout), lambda b: (0, 0)),
            pl.BlockSpec((3, W * Cout, Wh * Cout), lambda b: (0, 0, 0)),
            pl.BlockSpec((3, W * Cout, Wh * Cout), lambda b: (0, 0, 0)),
            pl.BlockSpec((1, Wh * Cout), lambda b: (0, 0)),
            pl.BlockSpec((1, Wh * Cout), lambda b: (0, 0)),
        ],
        out_specs=pl.BlockSpec((1, H // 2, Wh * Cout), lambda b: (b, 0, 0)),
        compiler_params=pltpu.CompilerParams(
            dimension_semantics=("parallel",),
            vmem_limit_bytes=32 * 1024 * 1024,
        ),
    )(x, shifts, bw1, s1_t, o1_t, bw2e, bw2o, s2_t, o2_t)

    # Dropout (eval mode) == identity; back to the module's NCHW layout.
    return jnp.transpose(y.reshape(B, H // 2, Wh, Cout), (0, 3, 1, 2))


def init_params(key, cin, cout, dtype=jnp.float32):
    ks = jax.random.split(key, 12)

    def u(k, shape, bound):
        return jax.random.uniform(k, shape, dtype, -bound, bound)

    fan1 = cin * 9
    fan2 = cout * 9
    return dict(
        w1=u(ks[0], (3, 3, cin, cout), 1.0 / jnp.sqrt(fan1)),
        b1=u(ks[1], (cout,), 1.0 / jnp.sqrt(fan1)),
        g1=jax.random.uniform(ks[2], (cout,), dtype, 0.5, 1.5),
        bt1=u(ks[3], (cout,), 0.5),
        m1=u(ks[4], (cout,), 0.5),
        v1=jax.random.uniform(ks[5], (cout,), dtype, 0.5, 1.5),
        w2=u(ks[6], (3, 3, cout, cout), 1.0 / jnp.sqrt(fan2)),
        b2=u(ks[7], (cout,), 1.0 / jnp.sqrt(fan2)),
        g2=jax.random.uniform(ks[8], (cout,), dtype, 0.5, 1.5),
        bt2=u(ks[9], (cout,), 0.5),
        m2=u(ks[10], (cout,), 0.5),
        v2=jax.random.uniform(ks[11], (cout,), dtype, 0.5, 1.5),
    )


def reference(x_nchw, p, eps=1e-5, matmul_dtype=jnp.float32):
    # matmul_dtype=float32   -> exact eval-mode module semantics.
    # matmul_dtype=bfloat16  -> same quantization points as the kernel
    #                           (bf16 conv inputs/weights, f32 accumulate, f32 BN/ReLU).
    dn = ("NCHW", "HWIO", "NCHW")

    def conv(x, w, b):
        y = jax.lax.conv_general_dilated(
            x.astype(matmul_dtype), w.astype(matmul_dtype), (1, 1), ((1, 1), (1, 1)),
            dimension_numbers=dn, preferred_element_type=jnp.float32)
        return y + b[None, :, None, None]

    def bn(y, g, bt, m, v):
        return (g[None, :, None, None] * (y - m[None, :, None, None])
                / jnp.sqrt(v[None, :, None, None] + eps) + bt[None, :, None, None])

    y = jnp.maximum(bn(conv(x_nchw, p["w1"], p["b1"]),
                       p["g1"], p["bt1"], p["m1"], p["v1"]), 0.0)
    y = jnp.maximum(bn(conv(y, p["w2"], p["b2"]),
                       p["g2"], p["bt2"], p["m2"], p["v2"]), 0.0)
    y = jax.lax.reduce_window(y, -jnp.inf, jax.lax.max,
                              (1, 1, 2, 2), (1, 1, 2, 2), "VALID")
    return y


if __name__ == "__main__":
    key = jax.random.PRNGKey(0)
    kx, kp = jax.random.split(key)
    B, Cin, Cout, H, W = 2, 4, 8, 16, 16
    x = jax.random.normal(kx, (B, Cin, H, W), jnp.float32)
    params = init_params(kp, Cin, Cout)

    fwd = jax.jit(conv_block_forward)
    y = jax.block_until_ready(fwd(x, params))
    assert y.shape == (B, Cout, H // 2, W // 2), y.shape

    # Tight check vs. a reference with matching bf16 quantization points.
    y_bf = jax.block_until_ready(reference(x, params, matmul_dtype=jnp.bfloat16))
    err_bf = float(jnp.max(jnp.abs(y - y_bf)))
    assert jnp.allclose(y, y_bf, rtol=5e-3, atol=5e-3), f"bf16-ref max abs err {err_bf}"

    # Sanity check vs. the pure-f32 module semantics (bf16 matmul inputs => loose tol).
    y_f32 = jax.block_until_ready(reference(x, params))
    err = float(jnp.max(jnp.abs(y - y_f32)))
    assert jnp.allclose(y, y_f32, rtol=1e-1, atol=1e-1), f"f32-ref max abs err {err}"

    print("KERNEL_OK")
</pallas_src>

<mosaic_0001>
module attributes {stable_mosaic.version = 11 : i64} {
  func.func @_conv_block_kernel(%arg0: i32, %arg1: memref<1x16x64xbf16, #tpu.memory_space<vmem>>, %arg2: memref<2x16x16xbf16, #tpu.memory_space<vmem>>, %arg3: memref<3x64x128xbf16, #tpu.memory_space<vmem>>, %arg4: memref<1x128xf32, #tpu.memory_space<vmem>>, %arg5: memref<1x128xf32, #tpu.memory_space<vmem>>, %arg6: memref<3x128x64xbf16, #tpu.memory_space<vmem>>, %arg7: memref<3x128x64xbf16, #tpu.memory_space<vmem>>, %arg8: memref<1x64xf32, #tpu.memory_space<vmem>>, %arg9: memref<1x64xf32, #tpu.memory_space<vmem>>, %arg10: memref<1x8x64xf32, #tpu.memory_space<vmem>>) attributes {dimension_semantics = [#tpu.dimension_semantics<parallel>], iteration_bounds = array<i64: 2>, scalar_prefetch = 0 : i64, scratch_operands = 0 : i64, tpu.core_type = #tpu.core_type<tc>, window_params = [{transform_indices = @transform_0, window_bounds = array<i64: 1, 16, 64>}, {pipeline_mode = #tpu.pipeline_mode<synchronous>, transform_indices = @transform_1, window_bounds = array<i64: 2, 16, 16>}, {pipeline_mode = #tpu.pipeline_mode<synchronous>, transform_indices = @transform_2, window_bounds = array<i64: 3, 64, 128>}, {pipeline_mode = #tpu.pipeline_mode<synchronous>, transform_indices = @transform_3, window_bounds = array<i64: 1, 128>}, {pipeline_mode = #tpu.pipeline_mode<synchronous>, transform_indices = @transform_4, window_bounds = array<i64: 1, 128>}, {pipeline_mode = #tpu.pipeline_mode<synchronous>, transform_indices = @transform_5, window_bounds = array<i64: 3, 128, 64>}, {pipeline_mode = #tpu.pipeline_mode<synchronous>, transform_indices = @transform_6, window_bounds = array<i64: 3, 128, 64>}, {pipeline_mode = #tpu.pipeline_mode<synchronous>, transform_indices = @transform_7, window_bounds = array<i64: 1, 64>}, {pipeline_mode = #tpu.pipeline_mode<synchronous>, transform_indices = @transform_8, window_bounds = array<i64: 1, 64>}, {transform_indices = @transform_9, window_bounds = array<i64: 1, 8, 64>}]} {
    %c0 = arith.constant 0 : index
    %c0_0 = arith.constant 0 : index
    %c0_1 = arith.constant 0 : index
    %0 = vector.load %arg1[%c0, %c0_0, %c0_1] : memref<1x16x64xbf16, #tpu.memory_space<vmem>>, vector<1x16x64xbf16>
    %1 = vector.shape_cast %0 : vector<1x16x64xbf16> to vector<16x64xbf16>
    %c0_2 = arith.constant 0 : index
    %c0_3 = arith.constant 0 : index
    %c0_4 = arith.constant 0 : index
    %2 = vector.load %arg2[%c0_2, %c0_3, %c0_4] : memref<2x16x16xbf16, #tpu.memory_space<vmem>>, vector<1x16x16xbf16>
    %3 = vector.shape_cast %2 : vector<1x16x16xbf16> to vector<16x16xbf16>
    %c1 = arith.constant 1 : index
    %c0_5 = arith.constant 0 : index
    %c0_6 = arith.constant 0 : index
    %4 = vector.load %arg2[%c1, %c0_5, %c0_6] : memref<2x16x16xbf16, #tpu.memory_space<vmem>>, vector<1x16x16xbf16>
    %5 = vector.shape_cast %4 : vector<1x16x16xbf16> to vector<16x16xbf16>
    %cst = arith.constant dense<0.000000e+00> : vector<16x64xf32>
    %6 = tpu.matmul %3, %1, %cst {dimension_numbers = #tpu.dot_dimension_numbers<[1], [0], [0], [1], [0, 0, 1, 1], [], []>} : vector<16x16xbf16>, vector<16x64xbf16>, vector<16x64xf32> -> vector<16x64xf32>
    %7 = arith.truncf %6 : vector<16x64xf32> to vector<16x64xbf16>
    %cst_7 = arith.constant dense<0.000000e+00> : vector<16x64xf32>
    %8 = tpu.matmul %5, %1, %cst_7 {dimension_numbers = #tpu.dot_dimension_numbers<[1], [0], [0], [1], [0, 0, 1, 1], [], []>} : vector<16x16xbf16>, vector<16x64xbf16>, vector<16x64xf32> -> vector<16x64xf32>
    %9 = arith.truncf %8 : vector<16x64xf32> to vector<16x64xbf16>
    %c0_8 = arith.constant 0 : index
    %c0_9 = arith.constant 0 : index
    %c0_10 = arith.constant 0 : index
    %10 = vector.load %arg3[%c0_8, %c0_9, %c0_10] : memref<3x64x128xbf16, #tpu.memory_space<vmem>>, vector<1x64x128xbf16>
    %11 = vector.shape_cast %10 : vector<1x64x128xbf16> to vector<64x128xbf16>
    %cst_11 = arith.constant dense<0.000000e+00> : vector<16x128xf32>
    %12 = tpu.matmul %7, %11, %cst_11 {dimension_numbers = #tpu.dot_dimension_numbers<[1], [0], [0], [1], [0, 0, 1, 1], [], []>} : vector<16x64xbf16>, vector<64x128xbf16>, vector<16x128xf32> -> vector<16x128xf32>
    %c1_12 = arith.constant 1 : index
    %c0_13 = arith.constant 0 : index
    %c0_14 = arith.constant 0 : index
    %13 = vector.load %arg3[%c1_12, %c0_13, %c0_14] : memref<3x64x128xbf16, #tpu.memory_space<vmem>>, vector<1x64x128xbf16>
    %14 = vector.shape_cast %13 : vector<1x64x128xbf16> to vector<64x128xbf16>
    %cst_15 = arith.constant dense<0.000000e+00> : vector<16x128xf32>
    %15 = tpu.matmul %1, %14, %cst_15 {dimension_numbers = #tpu.dot_dimension_numbers<[1], [0], [0], [1], [0, 0, 1, 1], [], []>} : vector<16x64xbf16>, vector<64x128xbf16>, vector<16x128xf32> -> vector<16x128xf32>
    %16 = arith.addf %12, %15 : vector<16x128xf32>
    %c2 = arith.constant 2 : index
    %c0_16 = arith.constant 0 : index
    %c0_17 = arith.constant 0 : index
    %17 = vector.load %arg3[%c2, %c0_16, %c0_17] : memref<3x64x128xbf16, #tpu.memory_space<vmem>>, vector<1x64x128xbf16>
    %18 = vector.shape_cast %17 : vector<1x64x128xbf16> to vector<64x128xbf16>
    %cst_18 = arith.constant dense<0.000000e+00> : vector<16x128xf32>
    %19 = tpu.matmul %9, %18, %cst_18 {dimension_numbers = #tpu.dot_dimension_numbers<[1], [0], [0], [1], [0, 0, 1, 1], [], []>} : vector<16x64xbf16>, vector<64x128xbf16>, vector<16x128xf32> -> vector<16x128xf32>
    %20 = arith.addf %16, %19 : vector<16x128xf32>
    %c0_19 = arith.constant 0 : index
    %c0_20 = arith.constant 0 : index
    %21 = vector.load %arg4[%c0_19, %c0_20] : memref<1x128xf32, #tpu.memory_space<vmem>>, vector<1x128xf32>
    %22 = vector.broadcast %21 : vector<1x128xf32> to vector<16x128xf32>
    %23 = arith.mulf %20, %22 : vector<16x128xf32>
    %c0_21 = arith.constant 0 : index
    %c0_22 = arith.constant 0 : index
    %24 = vector.load %arg5[%c0_21, %c0_22] : memref<1x128xf32, #tpu.memory_space<vmem>>, vector<1x128xf32>
    %25 = vector.broadcast %24 : vector<1x128xf32> to vector<16x128xf32>
    %26 = arith.addf %23, %25 : vector<16x128xf32>
    %cst_23 = arith.constant 0.000000e+00 : f32
    %27 = vector.broadcast %cst_23 : f32 to vector<16x128xf32>
    %28 = arith.maximumf %26, %27 : vector<16x128xf32>
    %29 = arith.truncf %28 : vector<16x128xf32> to vector<16x128xbf16>
    %cst_24 = arith.constant dense<0.000000e+00> : vector<16x128xf32>
    %30 = tpu.matmul %3, %29, %cst_24 {dimension_numbers = #tpu.dot_dimension_numbers<[1], [0], [0], [1], [0, 0, 1, 1], [], []>} : vector<16x16xbf16>, vector<16x128xbf16>, vector<16x128xf32> -> vector<16x128xf32>
    %31 = arith.truncf %30 : vector<16x128xf32> to vector<16x128xbf16>
    %cst_25 = arith.constant dense<0.000000e+00> : vector<16x128xf32>
    %32 = tpu.matmul %5, %29, %cst_25 {dimension_numbers = #tpu.dot_dimension_numbers<[1], [0], [0], [1], [0, 0, 1, 1], [], []>} : vector<16x16xbf16>, vector<16x128xbf16>, vector<16x128xf32> -> vector<16x128xf32>
    %33 = arith.truncf %32 : vector<16x128xf32> to vector<16x128xbf16>
    %c0_26 = arith.constant 0 : index
    %c0_27 = arith.constant 0 : index
    %c0_28 = arith.constant 0 : index
    %34 = vector.load %arg6[%c0_26, %c0_27, %c0_28] : memref<3x128x64xbf16, #tpu.memory_space<vmem>>, vector<1x128x64xbf16>
    %35 = vector.shape_cast %34 : vector<1x128x64xbf16> to vector<128x64xbf16>
    %cst_29 = arith.constant dense<0.000000e+00> : vector<16x64xf32>
    %36 = tpu.matmul %31, %35, %cst_29 {dimension_numbers = #tpu.dot_dimension_numbers<[1], [0], [0], [1], [0, 0, 1, 1], [], []>} : vector<16x128xbf16>, vector<128x64xbf16>, vector<16x64xf32> -> vector<16x64xf32>
    %c1_30 = arith.constant 1 : index
    %c0_31 = arith.constant 0 : index
    %c0_32 = arith.constant 0 : index
    %37 = vector.load %arg6[%c1_30, %c0_31, %c0_32] : memref<3x128x64xbf16, #tpu.memory_space<vmem>>, vector<1x128x64xbf16>
    %38 = vector.shape_cast %37 : vector<1x128x64xbf16> to vector<128x64xbf16>
    %cst_33 = arith.constant dense<0.000000e+00> : vector<16x64xf32>
    %39 = tpu.matmul %29, %38, %cst_33 {dimension_numbers = #tpu.dot_dimension_numbers<[1], [0], [0], [1], [0, 0, 1, 1], [], []>} : vector<16x128xbf16>, vector<128x64xbf16>, vector<16x64xf32> -> vector<16x64xf32>
    %40 = arith.addf %36, %39 : vector<16x64xf32>
    %c2_34 = arith.constant 2 : index
    %c0_35 = arith.constant 0 : index
    %c0_36 = arith.constant 0 : index
    %41 = vector.load %arg6[%c2_34, %c0_35, %c0_36] : memref<3x128x64xbf16, #tpu.memory_space<vmem>>, vector<1x128x64xbf16>
    %42 = vector.shape_cast %41 : vector<1x128x64xbf16> to vector<128x64xbf16>
    %cst_37 = arith.constant dense<0.000000e+00> : vector<16x64xf32>
    %43 = tpu.matmul %33, %42, %cst_37 {dimension_numbers = #tpu.dot_dimension_numbers<[1], [0], [0], [1], [0, 0, 1, 1], [], []>} : vector<16x128xbf16>, vector<128x64xbf16>, vector<16x64xf32> -> vector<16x64xf32>
    %44 = arith.addf %40, %43 : vector<16x64xf32>
    %c0_38 = arith.constant 0 : index
    %c0_39 = arith.constant 0 : index
    %c0_40 = arith.constant 0 : index
    %45 = vector.load %arg7[%c0_38, %c0_39, %c0_40] : memref<3x128x64xbf16, #tpu.memory_space<vmem>>, vector<1x128x64xbf16>
    %46 = vector.shape_cast %45 : vector<1x128x64xbf16> to vector<128x64xbf16>
    %cst_41 = arith.constant dense<0.000000e+00> : vector<16x64xf32>
    %47 = tpu.matmul %31, %46, %cst_41 {dimension_numbers = #tpu.dot_dimension_numbers<[1], [0], [0], [1], [0, 0, 1, 1], [], []>} : vector<16x128xbf16>, vector<128x64xbf16>, vector<16x64xf32> -> vector<16x64xf32>
    %c1_42 = arith.constant 1 : index
    %c0_43 = arith.constant 0 : index
    %c0_44 = arith.constant 0 : index
    %48 = vector.load %arg7[%c1_42, %c0_43, %c0_44] : memref<3x128x64xbf16, #tpu.memory_space<vmem>>, vector<1x128x64xbf16>
    %49 = vector.shape_cast %48 : vector<1x128x64xbf16> to vector<128x64xbf16>
    %cst_45 = arith.constant dense<0.000000e+00> : vector<16x64xf32>
    %50 = tpu.matmul %29, %49, %cst_45 {dimension_numbers = #tpu.dot_dimension_numbers<[1], [0], [0], [1], [0, 0, 1, 1], [], []>} : vector<16x128xbf16>, vector<128x64xbf16>, vector<16x64xf32> -> vector<16x64xf32>
    %51 = arith.addf %47, %50 : vector<16x64xf32>
    %c2_46 = arith.constant 2 : index
    %c0_47 = arith.constant 0 : index
    %c0_48 = arith.constant 0 : index
    %52 = vector.load %arg7[%c2_46, %c0_47, %c0_48] : memref<3x128x64xbf16, #tpu.memory_space<vmem>>, vector<1x128x64xbf16>
    %53 = vector.shape_cast %52 : vector<1x128x64xbf16> to vector<128x64xbf16>
    %cst_49 = arith.constant dense<0.000000e+00> : vector<16x64xf32>
    %54 = tpu.matmul %33, %53, %cst_49 {dimension_numbers = #tpu.dot_dimension_numbers<[1], [0], [0], [1], [0, 0, 1, 1], [], []>} : vector<16x128xbf16>, vector<128x64xbf16>, vector<16x64xf32> -> vector<16x64xf32>
    %55 = arith.addf %51, %54 : vector<16x64xf32>
    %c0_50 = arith.constant 0 : index
    %c0_51 = arith.constant 0 : index
    %56 = vector.load %arg8[%c0_50, %c0_51] : memref<1x64xf32, #tpu.memory_space<vmem>>, vector<1x64xf32>
    %57 = vector.broadcast %56 : vector<1x64xf32> to vector<16x64xf32>
    %58 = arith.mulf %44, %57 : vector<16x64xf32>
    %c0_52 = arith.constant 0 : index
    %c0_53 = arith.constant 0 : index
    %59 = vector.load %arg9[%c0_52, %c0_53] : memref<1x64xf32, #tpu.memory_space<vmem>>, vector<1x64xf32>
    %60 = vector.broadcast %59 : vector<1x64xf32> to vector<16x64xf32>
    %61 = arith.addf %58, %60 : vector<16x64xf32>
    %cst_54 = arith.constant 0.000000e+00 : f32
    %62 = vector.broadcast %cst_54 : f32 to vector<16x64xf32>
    %63 = arith.maximumf %61, %62 : vector<16x64xf32>
    %c0_55 = arith.constant 0 : index
    %c0_56 = arith.constant 0 : index
    %64 = vector.load %arg8[%c0_55, %c0_56] : memref<1x64xf32, #tpu.memory_space<vmem>>, vector<1x64xf32>
    %65 = vector.broadcast %64 : vector<1x64xf32> to vector<16x64xf32>
    %66 = arith.mulf %55, %65 : vector<16x64xf32>
    %c0_57 = arith.constant 0 : index
    %c0_58 = arith.constant 0 : index
    %67 = vector.load %arg9[%c0_57, %c0_58] : memref<1x64xf32, #tpu.memory_space<vmem>>, vector<1x64xf32>
    %68 = vector.broadcast %67 : vector<1x64xf32> to vector<16x64xf32>
    %69 = arith.addf %66, %68 : vector<16x64xf32>
    %cst_59 = arith.constant 0.000000e+00 : f32
    %70 = vector.broadcast %cst_59 : f32 to vector<16x64xf32>
    %71 = arith.maximumf %69, %70 : vector<16x64xf32>
    %72 = arith.maximumf %63, %71 : vector<16x64xf32>
    %73 = vector.shape_cast %72 : vector<16x64xf32> to vector<8x2x64xf32>
    %74 = vector.extract_strided_slice %73 {offsets = [0, 0, 0], sizes = [8, 1, 64], strides = [1, 1, 1]} : vector<8x2x64xf32> to vector<8x1x64xf32>
    %75 = vector.shape_cast %74 : vector<8x1x64xf32> to vector<8x64xf32>
    %76 = vector.extract_strided_slice %73 {offsets = [0, 1, 0], sizes = [8, 1, 64], strides = [1, 1, 1]} : vector<8x2x64xf32> to vector<8x1x64xf32>
    %77 = vector.shape_cast %76 : vector<8x1x64xf32> to vector<8x64xf32>
    %78 = arith.maximumf %75, %77 : vector<8x64xf32>
    %c0_60 = arith.constant 0 : index
    %c0_61 = arith.constant 0 : index
    %c0_62 = arith.constant 0 : index
    %79 = vector.load %arg10[%c0_60, %c0_61, %c0_62] : memref<1x8x64xf32, #tpu.memory_space<vmem>>, vector<1x8x64xf32>
    %80 = vector.shape_cast %79 : vector<1x8x64xf32> to vector<8x64xf32>
    %81 = vector.shape_cast %78 : vector<8x64xf32> to vector<1x8x64xf32>
    tpu.vector_store %arg10[%c0_60, %c0_61, %c0_62], %81 {strides = array<i32>} : memref<1x8x64xf32, #tpu.memory_space<vmem>>, vector<1x8x64xf32>,
    return
  }
  func.func @transform_0(%arg0: i32) -> (i32, i32, i32) {
    %c0_i32 = arith.constant 0 : i32
    %c0_i32_0 = arith.constant 0 : i32
    %c0_i32_1 = arith.constant 0 : i32
    return %arg0, %c0_i32, %c0_i32_0 : i32, i32, i32
  }
  func.func @transform_1(%arg0: i32) -> (i32, i32, i32) {
    %c0_i32 = arith.constant 0 : i32
    %c0_i32_0 = arith.constant 0 : i32
    %c0_i32_1 = arith.constant 0 : i32
    %c0_i32_2 = arith.constant 0 : i32
    return %c0_i32, %c0_i32_0, %c0_i32_1 : i32, i32, i32
  }
  func.func @transform_2(%arg0: i32) -> (i32, i32, i32) {
    %c0_i32 = arith.constant 0 : i32
    %c0_i32_0 = arith.constant 0 : i32
    %c0_i32_1 = arith.constant 0 : i32
    %c0_i32_2 = arith.constant 0 : i32
    return %c0_i32, %c0_i32_0, %c0_i32_1 : i32, i32, i32
  }
  func.func @transform_3(%arg0: i32) -> (i32, i32) {
    %c0_i32 = arith.constant 0 : i32
    %c0_i32_0 = arith.constant 0 : i32
    %c0_i32_1 = arith.constant 0 : i32
    return %c0_i32, %c0_i32_0 : i32, i32
  }
  func.func @transform_4(%arg0: i32) -> (i32, i32) {
    %c0_i32 = arith.constant 0 : i32
    %c0_i32_0 = arith.constant 0 : i32
    %c0_i32_1 = arith.constant 0 : i32
    return %c0_i32, %c0_i32_0 : i32, i32
  }
  func.func @transform_5(%arg0: i32) -> (i32, i32, i32) {
    %c0_i32 = arith.constant 0 : i32
    %c0_i32_0 = arith.constant 0 : i32
    %c0_i32_1 = arith.constant 0 : i32
    %c0_i32_2 = arith.constant 0 : i32
    return %c0_i32, %c0_i32_0, %c0_i32_1 : i32, i32, i32
  }
  func.func @transform_6(%arg0: i32) -> (i32, i32, i32) {
    %c0_i32 = arith.constant 0 : i32
    %c0_i32_0 = arith.constant 0 : i32
    %c0_i32_1 = arith.constant 0 : i32
    %c0_i32_2 = arith.constant 0 : i32
    return %c0_i32, %c0_i32_0, %c0_i32_1 : i32, i32, i32
  }
  func.func @transform_7(%arg0: i32) -> (i32, i32) {
    %c0_i32 = arith.constant 0 : i32
    %c0_i32_0 = arith.constant 0 : i32
    %c0_i32_1 = arith.constant 0 : i32
    return %c0_i32, %c0_i32_0 : i32, i32
  }
  func.func @transform_8(%arg0: i32) -> (i32, i32) {
    %c0_i32 = arith.constant 0 : i32
    %c0_i32_0 = arith.constant 0 : i32
    %c0_i32_1 = arith.constant 0 : i32
    return %c0_i32, %c0_i32_0 : i32, i32
  }
  func.func @transform_9(%arg0: i32) -> (i32, i32, i32) {
    %c0_i32 = arith.constant 0 : i32
    %c0_i32_0 = arith.constant 0 : i32
    %c0_i32_1 = arith.constant 0 : i32
    return %arg0, %c0_i32, %c0_i32_0 : i32, i32, i32
  }
}

</mosaic_0001>

<bundles_post_ra>
// kernel: tile.23
= control target key start
LH: loop header
LB: loop body
LE: loop exit
PB: predicated region body
PF: predicated region fallthrough
CT: control target
= control target key end

     0   :  { %s28_s0 = inlined_call_operand.vmem [shape: f32[8], index: 0, kind: input, shape index: {}]   ;;  %s29_s1 = inlined_call_operand.vmem [shape: f32[16,8], index: 1, kind: output, shape index: {}]  }
   0x1   :  { %v4_v0 = vld [vmem:[%s28_s0] ss:$0 sm:$0xff] }
   0x2   :  { %5 = vst [vmem:[%s29_s1] sm:$0xff] %v4_v0  ;;  %8 = vst [vmem:[%s29_s1 + $0x8] sm:$0xff] %v4_v0 }

// kernel: tile.24
= control target key start
LH: loop header
LB: loop body
LE: loop exit
PB: predicated region body
PF: predicated region fallthrough
CT: control target
= control target key end

     0   :  { %s131_s10 = smov 120   ;;  %s132_s11 = smov 104   ;;  %vm3_vm0 = vcmask 64512   ;;  %vm9_vm1 = vcmask 1048512   ;;  %vm15_vm2 = vcmask 982912   ;;  %vm21_vm3 = vcmask 917312   ;;  %s207_s0 = inlined_call_operand.vmem [shape: f32[16,8], index: 0, kind: input, shape index: {}]   ;;  %s208_s1 = inlined_call_operand.vmem [shape: f32[1,128], index: 1, kind: output, shape index: {}]  }
   0x1   :  { %v101_v0 = vld [vmem:[%s207_s0 + $0xf] sm:$0x1]   ;;  %v103_v1 = vld [vmem:[%s207_s0 + $0xd] sm:$0x1]   ;;  %v102_v2 = vld [vmem:[%s207_s0 + $0xe] sm:$0x1]  }
   0x2   :  { %7 = vrot.lane.b32.xlu0 %v101_v0, %s131_s10  ;;  %19 = vrot.lane.b32.xlu1 %v103_v1, %s132_s11  ;;  %v104_v3 = vld [vmem:[%s207_s0 + $0xc] sm:$0x1]   ;;  %s133_s16 = smov 112   ;;  %s134_s17 = smov 96   ;;  %v105_v4 = vld [vmem:[%s207_s0 + $0xb] sm:$0x1]  }
   0x3   :  { %v106_v5 = vld [vmem:[%s207_s0 + $0xa] sm:$0x1]   ;;  %v2_v6 = vld [vmem:[%s207_s0] sm:$0x1]   ;;  %s135_s24 = smov 88   ;;  %s136_s25 = smov 80  }
   0x4   :  { %4 = vst.msk [vmem:[#allocation0] sm:$0x1] %vm3_vm0, %v2_v6   ;;  %v107_v7 = vld [vmem:[%s207_s0 + $0x9] sm:$0x1]   ;;  %v108_v8 = vld [vmem:[%s207_s0 + $0x8] sm:$0x1]  }
   0x5   :  { %s137_s30 = smov 72   ;;  %s138_s2 = smov 64   ;;  %v109_v9 = vld [vmem:[%s207_s0 + $0x7] sm:$0x1]   ;;  %v110_v10 = vld [vmem:[%s207_s0 + $0x6] sm:$0x1]  }
   0x6   :  { %13 = vrot.lane.b32.xlu0 %v102_v2, %s133_s16  ;;  %25 = vrot.lane.b32.xlu1 %v104_v3, %s134_s17  ;;  %s139_s7 = smov 56   ;;  %s140_s8 = smov 48   ;;  %v111_v11 = vld [vmem:[%s207_s0 + $0x5] sm:$0x1]   ;;  %v112_v12 = vld [vmem:[%s207_s0 + $0x4] sm:$0x1]  }
   0x7   :  { %s141_s13 = smov 40   ;;  %s142_s14 = smov 32   ;;  %v113_v13 = vld [vmem:[%s207_s0 + $0x3] sm:$0x1]   ;;  %v114_v14 = vld [vmem:[%s207_s0 + $0x2] sm:$0x1]  }
   0x8   :  { %s143_s19 = smov 24   ;;  %s144_s20 = smov 16   ;;  %v115_v15 = vld [vmem:[%s207_s0 + $0x1] sm:$0x1]   ;;  %vm27_vm4 = vcmask 851712   ;;  %vm33_vm5 = vcmask 786112  }
   0x9   :  { %s145_s0 = smov 8   ;;  %vm39_vm6 = vcmask 720512   ;;  %vm45_vm7 = vcmask 654912   ;;  %vm51_vm8 = vcmask 589312   ;;  %vm57_vm9 = vcmask 523712  }
   0xa   :  { %31 = vrot.lane.b32.xlu0 %v105_v4, %s135_s24  ;;  %37 = vrot.lane.b32.xlu1 %v106_v5, %s136_s25  ;;  %vm63_vm10 = vcmask 458112   ;;  %vm69_vm11 = vcmask 392512   ;;  %vm75_vm12 = vcmask 326912   ;;  %vm81_vm13 = vcmask 261312  }
   0xb   :  { %vm87_vm14 = vcmask 195712   ;;  %vm93_vm15 = vcmask 130112  }
   0xe   :  { %43 = vrot.lane.b32.xlu0 %v107_v7, %s137_s30  ;;  %49 = vrot.lane.b32.xlu1 %v108_v8, %s138_s2 }
  0x12   :  { %55 = vrot.lane.b32.xlu0 %v109_v9, %s139_s7  ;;  %61 = vrot.lane.b32.xlu1 %v110_v10, %s140_s8 }
  0x16   :  { %67 = vrot.lane.b32.xlu0 %v111_v11, %s141_s13  ;;  %73 = vrot.lane.b32.xlu1 %v112_v12, %s142_s14 }
  0x1a   :  { %79 = vrot.lane.b32.xlu0 %v113_v13, %s143_s19  ;;  %85 = vrot.lane.b32.xlu1 %v114_v14, %s144_s20 }
  0x1e   :  { %91 = vrot.lane.b32.xlu0 %v115_v15, %s145_s0 }
  0x74   :  { %v8_v16 = vpop.permute.xlu0 %7   ;;  %v20_v17 = vpop.permute.xlu1 %19  }
  0x75   :  { %10 = vst.msk [vmem:[#allocation0] sm:$0x1] %vm9_vm1, %v8_v16  }
  0x78   :  { %v14_v18 = vpop.permute.xlu0 %13   ;;  %v26_v19 = vpop.permute.xlu1 %25  }
  0x79   :  { %16 = vst.msk [vmem:[#allocation0] sm:$0x1] %vm15_vm2, %v14_v18  }
  0x7a   :  { %22 = vst.msk [vmem:[#allocation0] sm:$0x1] %vm21_vm3, %v20_v17  }
  0x7b   :  { %28 = vst.msk [vmem:[#allocation0] sm:$0x1] %vm27_vm4, %v26_v19  }
  0x7c   :  { %v32_v20 = vpop.permute.xlu0 %31   ;;  %v38_v21 = vpop.permute.xlu1 %37  }
  0x7d   :  { %34 = vst.msk [vmem:[#allocation0] sm:$0x1] %vm33_vm5, %v32_v20  }
  0x7e   :  { %40 = vst.msk [vmem:[#allocation0] sm:$0x1] %vm39_vm6, %v38_v21  }
  0x80   :  { %v44_v22 = vpop.permute.xlu0 %43   ;;  %v50_v23 = vpop.permute.xlu1 %49  }
  0x81   :  { %46 = vst.msk [vmem:[#allocation0] sm:$0x1] %vm45_vm7, %v44_v22  }
  0x82   :  { %52 = vst.msk [vmem:[#allocation0] sm:$0x1] %vm51_vm8, %v50_v23  }
  0x84   :  { %v56_v24 = vpop.permute.xlu0 %55   ;;  %v62_v25 = vpop.permute.xlu1 %61  }
  0x85   :  { %58 = vst.msk [vmem:[#allocation0] sm:$0x1] %vm57_vm9, %v56_v24  }
  0x86   :  { %64 = vst.msk [vmem:[#allocation0] sm:$0x1] %vm63_vm10, %v62_v25  }
  0x88   :  { %v68_v26 = vpop.permute.xlu0 %67   ;;  %v74_v27 = vpop.permute.xlu1 %73  }
  0x89   :  { %70 = vst.msk [vmem:[#allocation0] sm:$0x1] %vm69_vm11, %v68_v26  }
  0x8a   :  { %76 = vst.msk [vmem:[#allocation0] sm:$0x1] %vm75_vm12, %v74_v27  }
  0x8c   :  { %v80_v28 = vpop.permute.xlu0 %79   ;;  %v86_v29 = vpop.permute.xlu1 %85  }
  0x8d   :  { %82 = vst.msk [vmem:[#allocation0] sm:$0x1] %vm81_vm13, %v80_v28  }
  0x8e   :  { %88 = vst.msk [vmem:[#allocation0] sm:$0x1] %vm87_vm14, %v86_v29  }
  0x90   :  { %v92_v30 = vpop.permute.xlu0 %91  }
  0x91   :  { %94 = vst.msk [vmem:[#allocation0] sm:$0x1] %vm93_vm15, %v92_v30  }
  0x98   :  { %v98_v31 = vld [vmem:[#allocation0] sm:$0x1] }
  0x99   :  { %100 = vst [vmem:[%s208_s1] sm:$0x1] %v98_v31 }

// kernel: tile.33
= control target key start
LH: loop header
LB: loop body
LE: loop exit
PB: predicated region body
PF: predicated region fallthrough
CT: control target
= control target key end

     0   :  { %s22_s0 = inlined_call_operand.vmem [shape: f32[8], index: 0, kind: input, shape index: {}]   ;;  %s23_s1 = inlined_call_operand.vmem [shape: f32[8,8], index: 1, kind: output, shape index: {}]  }
   0x1   :  { %v4_v0 = vld [vmem:[%s22_s0] ss:$0 sm:$0xff] }
   0x2   :  { %5 = vst [vmem:[%s23_s1] sm:$0xff] %v4_v0 }

// kernel: tile.34
= control target key start
LH: loop header
LB: loop body
LE: loop exit
PB: predicated region body
PF: predicated region fallthrough
CT: control target
= control target key end

     0   :  { %s67_s10 = smov 56   ;;  %s68_s11 = smov 40   ;;  %vm3_vm0 = vcmask 64512   ;;  %vm9_vm1 = vcmask 523712   ;;  %vm15_vm2 = vcmask 458112   ;;  %vm21_vm3 = vcmask 392512   ;;  %s111_s0 = inlined_call_operand.vmem [shape: f32[8,8], index: 0, kind: input, shape index: {}]   ;;  %s112_s1 = inlined_call_operand.vmem [shape: f32[1,64], index: 1, kind: output, shape index: {}]  }
   0x1   :  { %v53_v0 = vld [vmem:[%s111_s0 + $0x7] sm:$0x1]   ;;  %v55_v1 = vld [vmem:[%s111_s0 + $0x5] sm:$0x1]   ;;  %v54_v2 = vld [vmem:[%s111_s0 + $0x6] sm:$0x1]  }
   0x2   :  { %7 = vrot.lane.b32.xlu0 %v53_v0, %s67_s10  ;;  %19 = vrot.lane.b32.xlu1 %v55_v1, %s68_s11  ;;  %v56_v3 = vld [vmem:[%s111_s0 + $0x4] sm:$0x1]   ;;  %v2_v4 = vld [vmem:[%s111_s0] sm:$0x1]   ;;  %s69_s18 = smov 48   ;;  %s70_s19 = smov 32  }
   0x3   :  { %4 = vst.msk [vmem:[#allocation0] sm:$0x1] %vm3_vm0, %v2_v4   ;;  %v57_v5 = vld [vmem:[%s111_s0 + $0x3] sm:$0x1]   ;;  %v58_v6 = vld [vmem:[%s111_s0 + $0x2] sm:$0x1]  }
   0x4   :  { %s71_s24 = smov 24   ;;  %s72_s25 = smov 16   ;;  %v59_v7 = vld [vmem:[%s111_s0 + $0x1] sm:$0x1]   ;;  %vm27_vm4 = vcmask 326912   ;;  %vm33_vm5 = vcmask 261312  }
   0x5   :  { %s73_s0 = smov 8   ;;  %vm39_vm6 = vcmask 195712   ;;  %vm45_vm7 = vcmask 130112  }
   0x6   :  { %13 = vrot.lane.b32.xlu0 %v54_v2, %s69_s18  ;;  %25 = vrot.lane.b32.xlu1 %v56_v3, %s70_s19 }
   0xa   :  { %31 = vrot.lane.b32.xlu0 %v57_v5, %s71_s24  ;;  %37 = vrot.lane.b32.xlu1 %v58_v6, %s72_s25 }
   0xe   :  { %43 = vrot.lane.b32.xlu0 %v59_v7, %s73_s0 }
  0x74   :  { %v8_v8 = vpop.permute.xlu0 %7   ;;  %v20_v9 = vpop.permute.xlu1 %19  }
  0x75   :  { %10 = vst.msk [vmem:[#allocation0] sm:$0x1] %vm9_vm1, %v8_v8  }
  0x78   :  { %v14_v10 = vpop.permute.xlu0 %13   ;;  %v26_v11 = vpop.permute.xlu1 %25  }
  0x79   :  { %16 = vst.msk [vmem:[#allocation0] sm:$0x1] %vm15_vm2, %v14_v10  }
  0x7a   :  { %22 = vst.msk [vmem:[#allocation0] sm:$0x1] %vm21_vm3, %v20_v9  }
  0x7b   :  { %28 = vst.msk [vmem:[#allocation0] sm:$0x1] %vm27_vm4, %v26_v11  }
  0x7c   :  { %v32_v12 = vpop.permute.xlu0 %31   ;;  %v38_v13 = vpop.permute.xlu1 %37  }
  0x7d   :  { %34 = vst.msk [vmem:[#allocation0] sm:$0x1] %vm33_vm5, %v32_v12  }
  0x7e   :  { %40 = vst.msk [vmem:[#allocation0] sm:$0x1] %vm39_vm6, %v38_v13  }
  0x80   :  { %v44_v14 = vpop.permute.xlu0 %43  }
  0x81   :  { %46 = vst.msk [vmem:[#allocation0] sm:$0x1] %vm45_vm7, %v44_v14  }
  0x88   :  { %v50_v15 = vld [vmem:[#allocation0] sm:$0x1] }
  0x89   :  { %52 = vst [vmem:[%s112_s1] sm:$0x1] %v50_v15 }

// kernel: conv_block_forward.1
= control target key start
LH: loop header
LB: loop body
LE: loop exit
PB: predicated region body
PF: predicated region fallthrough
CT: control target
= control target key end

     0   :  { %s2224_s30 = smov 0   ;;  %s2554_s0 = inlined_call_operand.vmem [shape: bf16[2,16,64], index: 0, kind: input, shape index: {}]   ;;  %s2555_s1 = inlined_call_operand.vmem [shape: bf16[2,16,16], index: 1, kind: input, shape index: {}]   ;;  %s2556_s2 = inlined_call_operand.vmem [shape: bf16[3,64,128], index: 2, kind: input, shape index: {}]   ;;  %s2557_s3 = inlined_call_operand.vmem [shape: f32[1,128], index: 3, kind: input, shape index: {}]   ;;  %s2558_s4 = inlined_call_operand.vmem [shape: f32[1,128], index: 4, kind: input, shape index: {}]   ;;  %s2559_s5 = inlined_call_operand.vmem [shape: bf16[3,128,64], index: 5, kind: input, shape index: {}]   ;;  %s2560_s6 = inlined_call_operand.vmem [shape: bf16[3,128,64], index: 6, kind: input, shape index: {}]   ;;  %s2561_s7 = inlined_call_operand.vmem [shape: f32[1,64], index: 7, kind: input, shape index: {}]   ;;  %s2562_s8 = inlined_call_operand.vmem [shape: f32[1,64], index: 8, kind: input, shape index: {}]   ;;  %s2563_s9 = inlined_call_operand.vmem [shape: f32[2,8,64], index: 9, kind: output, shape index: {}]  }
   0x1 LB: > { %s1635_s10 = sadd.s32 4294967295, %s2169_s30   ;;  %p1639_p0 = scmp.ge.s32.totalorder %s2169_s30, 1  ;;  %s2169_s30 = sphi %s2224_s30, %s19_s30  }
   0x2   : > { %p287_p1 = scmp.lt.s32.totalorder %s2169_s30, 3 }
   0x4   : > { %p288_p2 = pnand %p1639_p0, %p287_p1 }
   0x5   : > { %p322_p3 = scmp.lt.s32.totalorder (!%p288_p2), %s1635_s10, 1  ;;  %v2171_v0 = vmov (!%p288_p2), 0.0   ;;  %vm2172_vm0 = vmmov (!%p288_p2), 0   ;;  %v2249_v1 = vld [vmem:[%s2555_s1] sm:$0xff] (!%p288_p2)   ;;  %v2254_v2 = vld [vmem:[%s2555_s1 + $0x8] sm:$0xff] (!%p288_p2)   ;;  %vm350_vm1 = vcmask (!%p288_p2), 130048  }
   0x6   : > { %291 = sbr.rel (%p288_p2) target bundleno = 965 (0x3c5), region = 56  ;;  %1887 = vmatprep.subr.bf16.mxu0 (!%p288_p2), %v2171_v0  ;;  %1889 = vmatprep.mubr.msk.bf16.mxu0 (!%p288_p2), %vm2172_vm0, %v2171_v0  ;;  %v2103_v4 = vld [vmem:[%s2556_s2] sm:$0xff] (!%p288_p2)   ;;  %v2104_v5 = vld [vmem:[%s2556_s2 + $0x8] sm:$0xff] (!%p288_p2)   ;;  %v2105_v6 = vld [vmem:[%s2556_s2 + $0x10] sm:$0xff] (!%p288_p2)   ;;  %vm487_vm2 = vcmask (!%p288_p2), 523264   ;;  %vm1566_vm3 = vcmask (!%p288_p2), 1041409  }
   0x7   : > { %1893 = vmatprep.subr.bf16.mxu1 (!%p288_p2), %v2171_v0  ;;  %1895 = vmatprep.mubr.msk.bf16.mxu1 (!%p288_p2), %vm2172_vm0, %v2171_v0  ;;  %v2106_v7 = vld [vmem:[%s2556_s2 + $0x18] sm:$0xff] (!%p288_p2)   ;;  %v2107_v8 = vld [vmem:[%s2556_s2 + $0x20] sm:$0xff] (!%p288_p2)   ;;  %v2109_v9 = vld [vmem:[%s2556_s2 + $0x28] sm:$0xff] (!%p288_p2)   ;;  %vm1568_vm4 = vcmask (!%p288_p2), 1042434   ;;  %vm1570_vm5 = vcmask (!%p288_p2), 1043459   ;;  %vm1572_vm6 = vcmask (!%p288_p2), 1044484  }
   0x8   : > { %v2111_v10 = vld [vmem:[%s2556_s2 + $0x30] sm:$0xff] (!%p288_p2)   ;;  %v2113_v11 = vld [vmem:[%s2556_s2 + $0x38] sm:$0xff] (!%p288_p2)   ;;  %v2108_v17 = vld [vmem:[%s2556_s2 + $0x40] sm:$0xff] (!%p288_p2)   ;;  %vm1574_vm7 = vcmask (!%p288_p2), 1045509   ;;  %vm1576_vm8 = vcmask (!%p288_p2), 1046534   ;;  %vm1578_vm9 = vcmask (!%p288_p2), 1047559  }
   0x9   : > { %v2110_v23 = vld [vmem:[%s2556_s2 + $0x48] sm:$0xff] (!%p288_p2)   ;;  %v2112_v24 = vld [vmem:[%s2556_s2 + $0x50] sm:$0xff] (!%p288_p2)   ;;  %v2114_v25 = vld [vmem:[%s2556_s2 + $0x58] sm:$0xff] (!%p288_p2)  }
   0xa   : > { %v2115_v26 = vld [vmem:[%s2560_s6 + $0x40] sm:$0xff] (!%p288_p2)   ;;  %v2116_v27 = vld [vmem:[%s2560_s6 + $0x48] sm:$0xff] (!%p288_p2)   ;;  %v2117_v28 = vld [vmem:[%s2560_s6 + $0x50] sm:$0xff] (!%p288_p2)  }
   0xb   : > { %v2118_v29 = vld [vmem:[%s2560_s6 + $0x58] sm:$0xff] (!%p288_p2)   ;;  %v2119_v30 = vld [vmem:[%s2560_s6 + $0x60] sm:$0xff] (!%p288_p2)   ;;  %v2120_v35 = vld [vmem:[%s2560_s6 + $0x68] sm:$0xff] (!%p288_p2)  }
   0xc   : > { %v2121_v36 = vld [vmem:[%s2560_s6 + $0x70] sm:$0xff] (!%p288_p2)   ;;  %v2122_v37 = vld [vmem:[%s2560_s6 + $0x78] sm:$0xff] (!%p288_p2)   ;;  %v1681_v39 = vld [vmem:[%s2557_s3] ss:$0 sm:$0xff] (!%p288_p2) }
   0xd   : > { %s2565_s10 = smov (!%p322_p3, %s1635_s10), 1  ;;  %v1682_v42 = vld [vmem:[%s2558_s4] ss:$0 sm:$0xff]  ;;  %v2134_v54 = vld [vmem:[%s2560_s6 + $0x8] sm:$0xff]   ;;  %v2136_v55 = vld [vmem:[%s2560_s6 + $0x10] sm:$0xff]  }
   0xe   : > { %s1809_s11 = sshll.u32 %s2565_s10, 3  ;;  %v2132_v52 = vld [vmem:[%s2560_s6] sm:$0xff]   ;;  %v2138_v57 = vld [vmem:[%s2560_s6 + $0x18] sm:$0xff]   ;;  %v2124_v58 = vld [vmem:[%s2559_s5 + $0x48] sm:$0xff]  }
   0xf   : > { %s326_s14 = scalar_lea.vmem %s2554_s0, %s1809_s11  ;;  %v2123_v56 = vld [vmem:[%s2559_s5 + $0x40] sm:$0xff]   ;;  %v2125_v60 = vld [vmem:[%s2559_s5 + $0x50] sm:$0xff]   ;;  %v2142_v61 = vld [vmem:[%s2560_s6 + $0x28] sm:$0xff]   ;;  %s330_s23 = scalar_lea.vmem %s2563_s9, %s1809_s11 }
  0x10   : > { %v2100_v3 = vld [vmem:[%s326_s14] sm:$0xff]   ;;  %v2126_v62 = vld [vmem:[%s2559_s5 + $0x58] sm:$0xff]   ;;  %v2144_v63 = vld [vmem:[%s2560_s6 + $0x30] sm:$0xff]  }
  0x11   : > { %1888 = vmatpush3.bf16.msra.mxu0 %v2100_v3  ;;  %1894 = vmatpush3.bf16.msra.mxu1 %v2100_v3  ;;  %v2140_v59 = vld [vmem:[%s2560_s6 + $0x20] sm:$0xff]  }
  0x12   : > { %1911 = vmatprep.subr.bf16.mxu0 %v2171_v0  ;;  %1899 = vmatprep.subr.bf16.mxu1 %v2171_v0 }
  0x14   : > { %1890 = vmatmul.mubr.msk.bf16.vlgmr.msra.gmra.mrb[0].mxu0 %vm350_vm1, %v2249_v1  ;;  %1896 = vmatmul.mubr.msk.bf16.vlgmr.msra.gmra.mrb[0].mxu1 %vm350_vm1, %v2254_v2 }
  0x15   : > { %1912 = vmatpush3.bf16.msra.mxu0 %v2103_v4  ;;  %1919 = vmatprep.mubr.msk.bf16.mxu0 %vm2172_vm0, %v2171_v0  ;;  %v2130_v4 = vld [vmem:[%s2559_s5 + $0x78] sm:$0xff]  }
  0x16   : > { %1913 = vmatprep.subr.bf16.mxu0 %v2171_v0  ;;  %1907 = vmatprep.mubr.msk.bf16.mxu1 %vm2172_vm0, %v2171_v0 }
  0x17   : > { %1900 = vmatpush3.bf16.msra.mxu1 %v2107_v8  ;;  %v2137_v8 = vld [vmem:[%s2559_s5 + $0x18] sm:$0xff]  }
  0x18   : > { %1901 = vmatprep.subr.bf16.mxu1 %v2171_v0 }
  0x19   : > { %1914 = vmatpush3.bf16.msra.mxu0 %v2104_v5  ;;  %v2131_v5 = vld [vmem:[%s2559_s5] sm:$0xff]  }
  0x1a   : > { %1915 = vmatprep.subr.bf16.mxu0 %v2171_v0 }
  0x1b   : > { %1902 = vmatpush3.bf16.msra.mxu1 %v2109_v9  ;;  %v2139_v9 = vld [vmem:[%s2559_s5 + $0x20] sm:$0xff]  }
  0x1c   : > { %1903 = vmatprep.subr.bf16.mxu1 %v2171_v0 }
  0x1d   : > { %1916 = vmatpush3.bf16.msra.mxu0 %v2105_v6  ;;  %v2133_v6 = vld [vmem:[%s2559_s5 + $0x8] sm:$0xff]  }
  0x1e   : > { %1917 = vmatprep.subr.bf16.mxu0 %v2171_v0 }
  0x1f   : > { %1904 = vmatpush3.bf16.msra.mxu1 %v2111_v10  ;;  %v2141_v10 = vld [vmem:[%s2559_s5 + $0x28] sm:$0xff]  }
  0x20   : > { %1905 = vmatprep.subr.bf16.mxu1 %v2171_v0 }
  0x21   : > { %1918 = vmatpush3.bf16.msra.mxu0 %v2106_v7  ;;  %v2135_v7 = vld [vmem:[%s2559_s5 + $0x10] sm:$0xff]  }
  0x22   : > { %1923 = vmatprep.subr.bf16.mxu0 %v2171_v0 }
  0x23   : > { %1906 = vmatpush3.bf16.msra.mxu1 %v2113_v11  ;;  %v2143_v11 = vld [vmem:[%s2559_s5 + $0x30] sm:$0xff]  }
  0x24   : > { %1935 = vmatprep.subr.bf16.mxu1 %v2171_v0 }
  0x26   : > { %1908 = vmatmul.mubr.msk.bf16.vlgmr.msra.gmra.mrb[4].mxu1 %vm487_vm2, %v2100_v3  ;;  %v2129_v3 = vld [vmem:[%s2559_s5 + $0x70] sm:$0xff]  }
  0x27   : > { %1937 = vmatprep.mubr.msk.bf16.mxu1 %vm2172_vm0, %v2171_v0 }
  0xe7   : > { %v388_v12 = vpop.f32.mrb[0].mxu0  ;;  %v438_v13 = vpop.f32.mrb[0].mxu1 }
  0xe8   : > { %v1891_v14 = vpop.f32.mrb[1].mxu0  ;;  %v1897_v15 = vpop.f32.mrb[1].mxu1 }
  0xe9   : > { %v391_v16 = vpop.f32.mrb[2].mxu0  ;;  %v441_v18 = vpop.f32.mrb[2].mxu1 }
  0xea   : > { %v395_v19 = vpack.c.bf16 %v391_v16, %v388_v12  ;;  %v1892_v20 = vpop.f32.mrb[3].mxu0  ;;  %v445_v21 = vpack.c.bf16 %v441_v18, %v438_v13  ;;  %v1898_v22 = vpop.f32.mrb[3].mxu1  ;;  %v2145_v12 = vld [vmem:[%s2559_s5 + $0x38] sm:$0xff]   ;;  %v2148_v18 = vld [vmem:[%s2560_s6 + $0x80] sm:$0xff]  }
  0xeb   : > { %v2146_v13 = vld [vmem:[%s2560_s6 + $0x38] sm:$0xff]   ;;  %v2150_v22 = vld [vmem:[%s2560_s6 + $0x88] sm:$0xff]  }
  0xec   : > { %1920 = vmatmul.mubr.msk.bf16.vlgmr.msra.gmra.mrb[4].mxu0 %vm487_vm2, %v395_v19 }
  0xed   : > { %1924 = vmatpush3.bf16.msra.mxu0 %v2108_v17  ;;  %1931 = vmatprep.mubr.msk.bf16.mxu0 %vm2172_vm0, %v2171_v0  ;;  %v2147_v17 = vld [vmem:[%s2559_s5 + $0x80] sm:$0xff]  }
  0xee   : > { %1925 = vmatprep.subr.bf16.mxu0 %v2171_v0 }
  0xf1   : > { %1926 = vmatpush3.bf16.msra.mxu0 %v2110_v23 }
  0xf2   : > { %1927 = vmatprep.subr.bf16.mxu0 %v2171_v0 }
  0xf5   : > { %1928 = vmatpush3.bf16.msra.mxu0 %v2112_v24 }
  0xf6   : > { %1929 = vmatprep.subr.bf16.mxu0 %v2171_v0 }
  0xf9   : > { %1930 = vmatpush3.bf16.msra.mxu0 %v2114_v25  ;;  %v525_v31 = vpop.f32.mrb[4].mxu1  ;;  %v2151_v25 = vld [vmem:[%s2559_s5 + $0x90] sm:$0xff]  }
  0xfa   : > { %2007 = vmatprep.subr.bf16.mxu0 %v2171_v0  ;;  %v1909_v32 = vpop.f32.mrb[5].mxu1 }
  0xfb   : > { %v528_v33 = vpop.f32.mrb[6].mxu1  ;;  %v2155_v32 = vld [vmem:[%s2559_s5 + $0xa0] sm:$0xff]  }
  0xfc   : > { %1932 = vmatmul.mubr.msk.bf16.vlgmr.msra.gmra.mrb[4].mxu0 %vm487_vm2, %v445_v21  ;;  %v1910_v34 = vpop.f32.mrb[7].mxu1  ;;  %v2149_v21 = vld [vmem:[%s2559_s5 + $0x88] sm:$0xff]  }
  0xfd   : > { %2008 = vmatpush3.bf16.msra.mxu0 %v2115_v26  ;;  %2023 = vmatprep.mubr.msk.bf16.mxu0 %vm2172_vm0, %v2171_v0  ;;  %v2152_v26 = vld [vmem:[%s2560_s6 + $0x90] sm:$0xff]   ;;  %v2157_v34 = vld [vmem:[%s2559_s5 + $0xa8] sm:$0xff]  }
  0xfe   : > { %2009 = vmatprep.subr.bf16.mxu0 %v2171_v0 }
 0x101   : > { %2010 = vmatpush3.bf16.msra.mxu0 %v2116_v27 }
 0x102   : > { %2011 = vmatprep.subr.bf16.mxu0 %v2171_v0 }
 0x105   : > { %2012 = vmatpush3.bf16.msra.mxu0 %v2117_v28 }
 0x106   : > { %2013 = vmatprep.subr.bf16.mxu0 %v2171_v0 }
 0x109   : > { %2014 = vmatpush3.bf16.msra.mxu0 %v2118_v29 }
 0x10a   : > { %2015 = vmatprep.subr.bf16.mxu0 %v2171_v0 }
 0x10d   : > { %2016 = vmatpush3.bf16.msra.mxu0 %v2119_v30  ;;  %v2153_v30 = vld [vmem:[%s2559_s5 + $0x98] sm:$0xff]  }
 0x10e   : > { %2017 = vmatprep.subr.bf16.mxu0 %v2171_v0 }
 0x111   : > { %2018 = vmatpush3.bf16.msra.mxu0 %v2120_v35  ;;  %v2158_v35 = vld [vmem:[%s2560_s6 + $0xa8] sm:$0xff]  }
 0x112   : > { %2019 = vmatprep.subr.bf16.mxu0 %v2171_v0 }
 0x115   : > { %2020 = vmatpush3.bf16.msra.mxu0 %v2121_v36  ;;  %v2159_v36 = vld [vmem:[%s2559_s5 + $0xb0] sm:$0xff]  }
 0x116   : > { %2021 = vmatprep.subr.bf16.mxu0 %v2171_v0 }
 0x119   : > { %2022 = vmatpush3.bf16.msra.mxu0 %v2122_v37  ;;  %v2160_v37 = vld [vmem:[%s2560_s6 + $0xb0] sm:$0xff]  }
 0x11a   : > { %2027 = vmatprep.subr.bf16.mxu0 %v2171_v0 }
 0x1cf   : > { %v670_v38 = vpop.f32.mrb[4].mxu0 }
 0x1d0   : > { %v2067_v40 = vadd.f32 %v670_v38, %v525_v31  ;;  %v1933_v41 = vpop.f32.mrb[5].mxu0  ;;  %v2154_v31 = vld [vmem:[%s2560_s6 + $0x98] sm:$0xff]  }
 0x1d1   : > { %v673_v43 = vpop.f32.mrb[6].mxu0  ;;  %v2161_v38 = vld [vmem:[%s2559_s5 + $0xb8] sm:$0xff]  }
 0x1d2   : > { %v686_v44 = vmul.f32 %v2067_v40, %v1681_v39  ;;  %v2068_v45 = vadd.f32 %v673_v43, %v528_v33  ;;  %v1934_v46 = vpop.f32.mrb[7].mxu0  ;;  %v2156_v33 = vld [vmem:[%s2560_s6 + $0xa0] sm:$0xff]   ;;  %v2173_v40 = vmov 1983009808  }
 0x1d3   : > { %v1454_v41 = vunpack.c.l.s4 %v2173_v40  ;;  %v1797_v43 = vld [vmem:[%s2561_s7] ss:$0 sm:$0xff] }
 0x1d4   : > { %v695_v47 = vadd.f32 %v1682_v42, %v686_v44  ;;  %v687_v48 = vmul.f32 %v2068_v45, %v1681_v39  ;;  %v2162_v39 = vld [vmem:[%s2560_s6 + $0xb8] sm:$0xff]   ;;  %v1798_v45 = vld [vmem:[%s2562_s8] ss:$0 sm:$0xff] }
 0x1d6   : > { %v696_v49 = vadd.f32 %v1682_v42, %v687_v48  ;;  %v697_v50 = vmax.f32 %v695_v47, 0.0  ;;  %v1456_v42 = vlaneseq  ;;  %v1455_v47 = vunpack.c.0.s8 %v1454_v41 }
 0x1d8   : > { %v698_v51 = vmax.f32 %v696_v49, 0.0  ;;  %v1457_v48 = vshrl.u32 %v1456_v42, 7 }
 0x1da   : > { %v699_v53 = vpack.c.bf16 %v698_v51, %v697_v50 }
 0x1dc   : > { %1936 = vmatpush3.bf16.msra.mxu1 %v699_v53  ;;  %2024 = vmatmul.mubr.bf16.vlgmr.msra.gmra.mrb[8].mxu0 %v699_v53 }
 0x1dd   : > { %1941 = vmatprep.subr.bf16.mxu1 %v2171_v0  ;;  %2028 = vmatpush3.bf16.msra.mxu0 %v2132_v52 }
 0x1de   : > { %2029 = vmatprep.subr.bf16.mxu0 %v2171_v0  ;;  %2043 = vmatprep.mubr.msk.bf16.mxu0 %vm2172_vm0, %v2171_v0 }
 0x1df   : > { %1938 = vmatmul.mubr.msk.bf16.vlgmr.msra.gmra.mrb[8].mxu1 %vm350_vm1, %v2249_v1  ;;  %v2127_v1 = vld [vmem:[%s2559_s5 + $0x60] sm:$0xff]  }
 0x1e0   : > { %1942 = vmatpush3.bf16.msra.mxu1 %v699_v53  ;;  %1943 = vmatprep.mubr.msk.bf16.mxu1 %vm2172_vm0, %v2171_v0 }
 0x1e1   : > { %1947 = vmatprep.subr.bf16.mxu1 %v2171_v0  ;;  %2030 = vmatpush3.bf16.msra.mxu0 %v2134_v54 }
 0x1e2   : > { %2031 = vmatprep.subr.bf16.mxu0 %v2171_v0 }
 0x1e5   : > { %2032 = vmatpush3.bf16.msra.mxu0 %v2136_v55 }
 0x1e6   : > { %2033 = vmatprep.subr.bf16.mxu0 %v2171_v0 }
 0x1e7   : > { %1944 = vmatmul.mubr.msk.bf16.vlgmr.msra.gmra.mrb[12].mxu1 %vm350_vm1, %v2254_v2  ;;  %v2128_v2 = vld [vmem:[%s2559_s5 + $0x68] sm:$0xff]  }
 0x1e8   : > { %1948 = vmatpush3.bf16.msra.mxu1 %v2123_v56  ;;  %1963 = vmatprep.mubr.msk.bf16.mxu1 %vm2172_vm0, %v2171_v0 }
 0x1e9   : > { %1949 = vmatprep.subr.bf16.mxu1 %v2171_v0  ;;  %2034 = vmatpush3.bf16.msra.mxu0 %v2138_v57 }
 0x1ea   : > { %2035 = vmatprep.subr.bf16.mxu0 %v2171_v0 }
 0x1ec   : > { %1950 = vmatpush3.bf16.msra.mxu1 %v2124_v58 }
 0x1ed   : > { %1951 = vmatprep.subr.bf16.mxu1 %v2171_v0  ;;  %2036 = vmatpush3.bf16.msra.mxu0 %v2140_v59 }
 0x1ee   : > { %2037 = vmatprep.subr.bf16.mxu0 %v2171_v0 }
 0x1f0   : > { %1952 = vmatpush3.bf16.msra.mxu1 %v2125_v60  ;;  %v1458_v60 = vsub.s32 %v1455_v47, %v1457_v48 }
 0x1f1   : > { %1953 = vmatprep.subr.bf16.mxu1 %v2171_v0  ;;  %2038 = vmatpush3.bf16.msra.mxu0 %v2142_v61 }
 0x1f2   : > { %2039 = vmatprep.subr.bf16.mxu0 %v2171_v0 }
 0x1f4   : > { %1954 = vmatpush3.bf16.msra.mxu1 %v2126_v62 }
 0x1f5   : > { %1955 = vmatprep.subr.bf16.mxu1 %v2171_v0  ;;  %2040 = vmatpush3.bf16.msra.mxu0 %v2144_v63 }
 0x1f6   : > { %2041 = vmatprep.subr.bf16.mxu0 %v2171_v0 }
 0x1f8   : > { %1956 = vmatpush3.bf16.msra.mxu1 %v2127_v1 }
 0x1f9   : > { %1957 = vmatprep.subr.bf16.mxu1 %v2171_v0  ;;  %2042 = vmatpush3.bf16.msra.mxu0 %v2146_v13 }
 0x1fa   : > { %2047 = vmatprep.subr.bf16.mxu0 %v2171_v0 }
 0x1fc   : > { %1958 = vmatpush3.bf16.msra.mxu1 %v2128_v2 }
 0x1fd   : > { %1959 = vmatprep.subr.bf16.mxu1 %v2171_v0 }
 0x200   : > { %1960 = vmatpush3.bf16.msra.mxu1 %v2129_v3 }
 0x201   : > { %1961 = vmatprep.subr.bf16.mxu1 %v2171_v0 }
 0x204   : > { %1962 = vmatpush3.bf16.msra.mxu1 %v2130_v4 }
 0x205   : > { %1967 = vmatprep.subr.bf16.mxu1 %v2171_v0 }
 0x207   : > { %1964 = vmatmul.mubr.bf16.vlgmr.msra.gmra.mrb[16].mxu1 %v699_v53 }
 0x208   : > { %1968 = vmatpush3.bf16.msra.mxu1 %v2131_v5  ;;  %1983 = vmatprep.mubr.msk.bf16.mxu1 %vm2172_vm0, %v2171_v0 }
 0x209   : > { %1969 = vmatprep.subr.bf16.mxu1 %v2171_v0 }
 0x20c   : > { %1970 = vmatpush3.bf16.msra.mxu1 %v2133_v6 }
 0x20d   : > { %1971 = vmatprep.subr.bf16.mxu1 %v2171_v0 }
 0x210   : > { %1972 = vmatpush3.bf16.msra.mxu1 %v2135_v7 }
 0x211   : > { %1973 = vmatprep.subr.bf16.mxu1 %v2171_v0 }
 0x214   : > { %1974 = vmatpush3.bf16.msra.mxu1 %v2137_v8 }
 0x215   : > { %1975 = vmatprep.subr.bf16.mxu1 %v2171_v0 }
 0x218   : > { %1976 = vmatpush3.bf16.msra.mxu1 %v2139_v9 }
 0x219   : > { %1977 = vmatprep.subr.bf16.mxu1 %v2171_v0 }
 0x21c   : > { %1978 = vmatpush3.bf16.msra.mxu1 %v2141_v10 }
 0x21d   : > { %1979 = vmatprep.subr.bf16.mxu1 %v2171_v0 }
 0x220   : > { %1980 = vmatpush3.bf16.msra.mxu1 %v2143_v11 }
 0x221   : > { %1981 = vmatprep.subr.bf16.mxu1 %v2171_v0 }
 0x224   : > { %1982 = vmatpush3.bf16.msra.mxu1 %v2145_v12  ;;  %v1536_v12 = vsub.s32 0, %v1457_v48 }
 0x225   : > { %1987 = vmatprep.subr.bf16.mxu1 %v2171_v0 }
 0x2b2   : > { %v734_v14 = vpop.f32.mrb[8].mxu1 }
 0x2b3   : > { %v1939_v15 = vpop.f32.mrb[9].mxu1 }
 0x2b4   : > { %v737_v16 = vpop.f32.mrb[10].mxu1 }
 0x2b5   : > { %v741_v19 = vpack.c.bf16 %v737_v16, %v734_v14  ;;  %v1940_v20 = vpop.f32.mrb[11].mxu1 }
 0x2b7   : > { %1984 = vmatmul.mubr.bf16.vlgmr.msra.gmra.mrb[16].mxu1 %v741_v19  ;;  %2044 = vmatmul.mubr.bf16.vlgmr.msra.gmra.mrb[8].mxu0 %v741_v19 }
 0x2b8   : > { %1988 = vmatpush3.bf16.msra.mxu1 %v2147_v17  ;;  %2048 = vmatpush3.bf16.msra.mxu0 %v2148_v18 }
 0x2b9   : > { %1989 = vmatprep.subr.bf16.mxu1 %v2171_v0  ;;  %2049 = vmatprep.subr.bf16.mxu0 %v2171_v0 }
 0x2ba   : > { %v776_v23 = vpop.f32.mrb[12].mxu1  ;;  %2003 = vmatprep.mubr.msk.bf16.mxu1 %vm2172_vm0, %v2171_v0  ;;  %2063 = vmatprep.mubr.msk.bf16.mxu0 %vm2172_vm0, %v2171_v0 }
 0x2bb   : > { %v1945_v24 = vpop.f32.mrb[13].mxu1 }
 0x2bc   : > { %1990 = vmatpush3.bf16.msra.mxu1 %v2149_v21  ;;  %2050 = vmatpush3.bf16.msra.mxu0 %v2150_v22  ;;  %v779_v27 = vpop.f32.mrb[14].mxu1 }
 0x2bd   : > { %1991 = vmatprep.subr.bf16.mxu1 %v2171_v0  ;;  %2051 = vmatprep.subr.bf16.mxu0 %v2171_v0  ;;  %v783_v28 = vpack.c.bf16 %v779_v27, %v776_v23  ;;  %v1946_v29 = vpop.f32.mrb[15].mxu1 }
 0x2c0   : > { %1992 = vmatpush3.bf16.msra.mxu1 %v2151_v25  ;;  %2052 = vmatpush3.bf16.msra.mxu0 %v2152_v26 }
 0x2c1   : > { %1993 = vmatprep.subr.bf16.mxu1 %v2171_v0  ;;  %2053 = vmatprep.subr.bf16.mxu0 %v2171_v0 }
 0x2c4   : > { %1994 = vmatpush3.bf16.msra.mxu1 %v2153_v30  ;;  %2054 = vmatpush3.bf16.msra.mxu0 %v2154_v31 }
 0x2c5   : > { %1995 = vmatprep.subr.bf16.mxu1 %v2171_v0  ;;  %2055 = vmatprep.subr.bf16.mxu0 %v2171_v0 }
 0x2c8   : > { %1996 = vmatpush3.bf16.msra.mxu1 %v2155_v32  ;;  %2056 = vmatpush3.bf16.msra.mxu0 %v2156_v33 }
 0x2c9   : > { %1997 = vmatprep.subr.bf16.mxu1 %v2171_v0  ;;  %2057 = vmatprep.subr.bf16.mxu0 %v2171_v0 }
 0x2cc   : > { %1998 = vmatpush3.bf16.msra.mxu1 %v2157_v34  ;;  %2058 = vmatpush3.bf16.msra.mxu0 %v2158_v35 }
 0x2cd   : > { %1999 = vmatprep.subr.bf16.mxu1 %v2171_v0  ;;  %2059 = vmatprep.subr.bf16.mxu0 %v2171_v0 }
 0x2d0   : > { %2000 = vmatpush3.bf16.msra.mxu1 %v2159_v36  ;;  %2060 = vmatpush3.bf16.msra.mxu0 %v2160_v37 }
 0x2d1   : > { %2001 = vmatprep.subr.bf16.mxu1 %v2171_v0  ;;  %2061 = vmatprep.subr.bf16.mxu0 %v2171_v0 }
 0x2d4   : > { %2002 = vmatpush3.bf16.msra.mxu1 %v2161_v38  ;;  %2062 = vmatpush3.bf16.msra.mxu0 %v2162_v39 }
 0x2d7   : > { %2004 = vmatmul.mubr.bf16.vlgmr.msra.gmra.mrb[16].mxu1 %v783_v28  ;;  %2064 = vmatmul.mubr.bf16.vlgmr.msra.gmra.mrb[8].mxu0 %v783_v28 }
 0x3aa   : > { %v1094_v44 = vpop.f32.mrb[16].mxu1  ;;  %v1413_v46 = vpop.f32.mrb[8].mxu0 }
 0x3ab   : > { %v1429_v0 = vmul.f32 %v1797_v43, %v1094_v44  ;;  %v1442_v49 = vmul.f32 %v1797_v43, %v1413_v46  ;;  %v2005_v50 = vpop.f32.mrb[17].mxu1  ;;  %v2065_v51 = vpop.f32.mrb[9].mxu0 }
 0x3ac   : > { %v1097_v52 = vpop.f32.mrb[18].mxu1  ;;  %v1416_v53 = vpop.f32.mrb[10].mxu0 }
 0x3ad   : > { %v1438_v54 = vadd.f32 %v1798_v45, %v1429_v0  ;;  %v1444_v55 = vadd.f32 %v1798_v45, %v1442_v49  ;;  %v1430_v56 = vmul.f32 %v1797_v43, %v1097_v52  ;;  %v1443_v57 = vmul.f32 %v1797_v43, %v1416_v53  ;;  %v2006_v58 = vpop.f32.mrb[19].mxu1  ;;  %v2066_v59 = vpop.f32.mrb[11].mxu0 }
 0x3af   : > { %v1440_v61 = vmax.f32 %v1438_v54, 0.0  ;;  %v1446_v62 = vmax.f32 %v1444_v55, 0.0  ;;  %v1439_v63 = vadd.f32 %v1798_v45, %v1430_v56  ;;  %v1445_v1 = vadd.f32 %v1798_v45, %v1443_v57 }
 0x3b1   : > { %v1448_v2 = vmax.f32 %v1440_v61, %v1446_v62  ;;  %v1441_v3 = vmax.f32 %v1439_v63, 0.0  ;;  %v1447_v4 = vmax.f32 %v1445_v1, 0.0 }
 0x3b3   : > { %v1452_v5 = vcombine.high %v1448_v2, %v1448_v2  ;;  %v1459_v6 = vrot.slane %v1448_v2, %v1458_v60  ;;  %v1449_v7 = vmax.f32 %v1441_v3, %v1447_v4 }
 0x3b5   : > { %v1466_v8 = vrot.slane %v1452_v5, %v1458_v60  ;;  %v1467_v9 = vcombine.high %v1459_v6, %v1459_v6  ;;  %v1799_v10 = vrot.slane %v1459_v6, 9  ;;  %v1469_v11 = vcombine.high %v1449_v7, %v1449_v7 }
 0x3b6   : > { %v1476_v13 = vrot.slane %v1449_v7, %v1458_v60 }
 0x3b7   : > { %v1468_v14 = vcombine.high %v1466_v8, %v1466_v8  ;;  %v1800_v15 = vrot.slane %v1467_v9, 9  ;;  %v1801_v16 = vrot.slane %v1466_v8, 9  ;;  %v1518_v17 = vmax.f32 %v1459_v6, %v1799_v10 }
 0x3b8   : > { %v1483_v18 = vrot.slane %v1469_v11, %v1458_v60  ;;  %v1484_v19 = vcombine.high %v1476_v13, %v1476_v13  ;;  %v1803_v20 = vrot.slane %v1476_v13, 9 }
 0x3b9   : > { %v1802_v21 = vrot.slane %v1468_v14, 9  ;;  %v1519_v22 = vmax.f32 %v1467_v9, %v1800_v15  ;;  %v1520_v23 = vmax.f32 %v1466_v8, %v1801_v16  ;;  %v1537_v29 = vrot.slane %v1518_v17, %v1536_v12 }
 0x3ba   : > { %v1485_v24 = vcombine.high %v1483_v18, %v1483_v18  ;;  %v1804_v25 = vrot.slane %v1484_v19, 9  ;;  %v1805_v26 = vrot.slane %v1483_v18, 9  ;;  %v1522_v27 = vmax.f32 %v1476_v13, %v1803_v20 }
 0x3bb   : > { %v1521_v28 = vmax.f32 %v1468_v14, %v1802_v21  ;;  %v1541_v30 = vrot.slane %v1519_v22, %v1536_v12  ;;  %v1545_v31 = vrot.slane %v1520_v23, %v1536_v12 }
 0x3bc   : > { %v1806_v32 = vrot.slane %v1485_v24, 9  ;;  %v1523_v33 = vmax.f32 %v1484_v19, %v1804_v25  ;;  %v1524_v34 = vmax.f32 %v1483_v18, %v1805_v26  ;;  %v1553_v39 = vrot.slane %v1522_v27, %v1536_v12 }
 0x3bd   : > { %v1549_v35 = vrot.slane %v1521_v28, %v1536_v12  ;;  %v1567_v36 = vsel %vm1566_vm3, %v1541_v30, %v1537_v29 }
 0x3be   : > { %v1569_v37 = vsel %vm1568_vm4, %v1545_v31, %v1567_v36  ;;  %v1525_v38 = vmax.f32 %v1485_v24, %v1806_v32  ;;  %v1557_v40 = vrot.slane %v1523_v33, %v1536_v12  ;;  %v1561_v42 = vrot.slane %v1524_v34, %v1536_v12 }
 0x3bf   : > { %v1571_v41 = vsel %vm1570_vm5, %v1549_v35, %v1569_v37 }
 0x3c0   : > { %v1573_v43 = vsel %vm1572_vm6, %v1553_v39, %v1571_v41  ;;  %v1565_v44 = vrot.slane %v1525_v38, %v1536_v12 }
 0x3c1   : > { %v1575_v45 = vsel %vm1574_vm7, %v1557_v40, %v1573_v43 }
 0x3c2   : > { %v1577_v46 = vsel %vm1576_vm8, %v1561_v42, %v1575_v45 }
 0x3c3   : > { %v1579_v47 = vsel %vm1578_vm9, %v1565_v44, %v1577_v46 }
 0x3c4   : > { %1581 = vst.msk [vmem:[%s330_s23] sm:$0xff] %vm487_vm2, %v1579_v47 }
 0x3c5 PF: > { %s19_s30 = sadd.s32 1, %s2169_s30  }
 0x3c6   : > { %p16_p4 = scmp.ge.s32.totalorder %s19_s30, 4  }
 0x3c8   :  { %18 = sbr.rel (!%p16_p4) target bundleno = 1 (0x1), region = 93 }

</bundles_post_ra>
